<compile_context>
chip_gen: v7x
topology: tpu7x:2x2x1
jax: 0.10.0
libtpu: 0.0.40
codegen_flags: <defaults>
</compile_context>

<pallas_src>
import functools

import numpy as np

import jax
import jax.numpy as jnp
from jax import lax
from jax.experimental import pallas as pl
from jax.experimental.pallas import tpu as pltpu

_LANE = 128
_SUBLANE = 8
# tap order t = (dy+1)*3 + (dx+1) == ky*3 + kx  (matches weight packing)
_TAPS = tuple((dy, dx) for dy in (-1, 0, 1) for dx in (-1, 0, 1))


def _round_up(v, m):
    return (v + m - 1) // m * m


def _tap_masks(H, W, l_pad):
    """(9, l_pad) f32: 1.0 where the 3x3 tap source is inside the image."""
    hw = H * W
    y = np.arange(hw) // W
    x = np.arange(hw) % W
    rows = []
    for dy, dx in _TAPS:
        m = np.zeros((l_pad,), np.float32)
        m[:hw] = ((y + dy >= 0) & (y + dy < H) &
                  (x + dx >= 0) & (x + dx < W)).astype(np.float32)
        rows.append(m)
    return np.stack(rows)


def _pool_select(H, W, l_in_pad, l_out_pad):
    """0/1 matrix compacting the even-(y,x) grid of an HxW image (flat,
    lane-padded) into the (H/2)x(W/2) flat output (lane-padded)."""
    Ho, Wo = H // 2, W // 2
    S = np.zeros((l_in_pad, l_out_pad), np.float32)
    for yo in range(Ho):
        for xo in range(Wo):
            S[2 * yo * W + 2 * xo, yo * Wo + xo] = 1.0
    return S


# ---------------------------------------------------------------------------
# Fused kernel: whole CNN forward for one batch element per grid step.
# ---------------------------------------------------------------------------
def _make_fused_cnn_kernel(num_blocks, block_geom, mxu_dtype):
    # block_geom: ((W_b, l_pad_b), ...) per conv block

    def conv3x3_relu(a, p_ref, m_ref, W, l_pad):
        # a: (cin_p, l_pad) f32    p_ref: (cout_p, 9*cin_p + 1)   m_ref: (9, l_pad)
        K = p_ref.shape[1] - 1
        pieces = []
        for t, (dy, dx) in enumerate(_TAPS):
            d = dy * W + dx                      # flat source offset of tap t
            if d == 0:
                sh = a
            else:
                # shifted[p] = a[p + d]  (lane rotate, XLU slot)
                sh = pltpu.roll(a, (-d) % l_pad, axis=1)
                sh = sh * m_ref[t:t + 1, :]      # zero the SAME-padding taps
            pieces.append(sh)
        stacked = jnp.concatenate(pieces, axis=0).astype(mxu_dtype)  # (9cin_p, l_pad)
        w = p_ref[:, 0:K].astype(mxu_dtype)                          # (cout_p, 9cin_p)
        b = p_ref[:, K:K + 1]                                        # (cout_p, 1) f32
        y = jnp.dot(w, stacked, preferred_element_type=jnp.float32)  # one MXU matmul
        return jnp.maximum(y + b, 0.0)

    def kernel(*refs):
        x_ref = refs[0]
        o_ref = refs[-1]
        prm = refs[1:-1]                                 # 4 refs per block
        a = x_ref[0]                                     # (c0_p, l_pad_0) f32
        for blk in range(num_blocks):
            Wb, l_pad = block_geom[blk]
            p1_ref, p2_ref, m_ref, s_ref = prm[4 * blk:4 * blk + 4]
            a = conv3x3_relu(a, p1_ref, m_ref, Wb, l_pad)
            a = conv3x3_relu(a, p2_ref, m_ref, Wb, l_pad)
            # 2x2 max-pool: rolled maxes give the (x+1)/(y+1) neighbours, the
            # 0/1 selection matmul compacts the even-(y,x) grid (exact, f32).
            h = jnp.maximum(a, pltpu.roll(a, (-1) % l_pad, axis=1))
            v = jnp.maximum(h, pltpu.roll(h, (-Wb) % l_pad, axis=1))
            a = jnp.dot(v, s_ref[...], preferred_element_type=jnp.float32)
        # (cout_p_last, Hf*Wf) is already contiguous in torch NCHW-flatten
        # order; single small store.
        o_ref[...] = a[None]
    return kernel


# ---------------------------------------------------------------------------
# Wrapper: one pallas_call for the whole network.
# ---------------------------------------------------------------------------
def cnn_forward(params, x_nchw, *, mxu_dtype=jnp.bfloat16):
    """params: flat list of packed conv params, two per conv_block.
       Each param is (Cout, 9*Cin + 1) f32 with column order
       (ky*3+kx)*Cin + cin and the bias in the last column.
       x_nchw: (N, C, H, W).  Returns (N, Cout_last * H * W / 4**L) flattened
       in torch NCHW order.
       NOTE: mxu_dtype=bf16 (default) rounds matmul inputs to bfloat16
       (f32 accumulation); pass jnp.float32 for exact-to-torch numerics."""
    num_blocks = len(params) // 2
    assert len(params) == 2 * num_blocks and num_blocks >= 1
    N, C0, H, W = x_nchw.shape
    assert H % (2 ** num_blocks) == 0 and W % (2 ** num_blocks) == 0, \
        "spatial dims must be divisible by 2**num_blocks (MaxPool2d(2) per block)"

    cins = [(p.shape[1] - 1) // 9 for p in params]
    couts = [p.shape[0] for p in params]
    assert cins[0] == C0, (cins[0], C0)

    # Pad every channel count to a multiple of 8 (sublane group) so each tap
    # occupies whole sublane groups; padded rows are exactly zero everywhere.
    def pad_param(p, cin, cout):
        cin_p, cout_p = _round_up(cin, _SUBLANE), _round_up(cout, _SUBLANE)
        w = p[:, :9 * cin].reshape(cout, 9, cin)
        b = p[:, 9 * cin:]
        w = jnp.pad(w, ((0, cout_p - cout), (0, 0), (0, cin_p - cin)))
        b = jnp.pad(b, ((0, cout_p - cout), (0, 0)))
        return jnp.concatenate([w.reshape(cout_p, 9 * cin_p), b],
                               axis=1).astype(jnp.float32)

    kparams = [pad_param(p, ci, co) for p, ci, co in zip(params, cins, couts)]

    c0_p = _round_up(C0, _SUBLANE)
    z = couts[-1]
    z_p = kparams[-1].shape[0]
    Hf, Wf = H >> num_blocks, W >> num_blocks

    # per-block geometry + constant tables (taps masks, pool selection)
    block_geom, masks, selects = [], [], []
    Hb, Wb = H, W
    for blk in range(num_blocks):
        l_pad = _round_up(Hb * Wb, _LANE)
        block_geom.append((Wb, l_pad))
        masks.append(jnp.asarray(_tap_masks(Hb, Wb, l_pad)))
        Ho, Wo = Hb // 2, Wb // 2
        l_out = _round_up(Ho * Wo, _LANE) if blk + 1 < num_blocks else Ho * Wo
        selects.append(jnp.asarray(_pool_select(Hb, Wb, l_pad, l_out)))
        Hb, Wb = Ho, Wo

    # Input: NCHW -> (N, C, H*W) is a free reshape (flat spatial goes to the
    # lane dim); pad channels to c0_p and spatial to a multiple of 128 lanes.
    l0 = block_geom[0][1]
    x = x_nchw.astype(jnp.float32).reshape(N, C0, H * W)
    x = jnp.pad(x, ((0, 0), (0, c0_p - C0), (0, l0 - H * W)))

    in_specs = [pl.BlockSpec((1, c0_p, l0), lambda n: (n, 0, 0))]
    args = [x]
    for blk in range(num_blocks):
        for arr in (kparams[2 * blk], kparams[2 * blk + 1],
                    masks[blk], selects[blk]):
            args.append(arr)
            # constant-index blocks: fetched once, reused across grid steps
            in_specs.append(pl.BlockSpec(arr.shape, lambda n: (0, 0)))

    out = pl.pallas_call(
        _make_fused_cnn_kernel(num_blocks, tuple(block_geom), mxu_dtype),
        out_shape=jax.ShapeDtypeStruct((N, z_p, Hf * Wf), jnp.float32),
        grid_spec=pltpu.PrefetchScalarGridSpec(
            num_scalar_prefetch=0,
            grid=(N,),                                   # batch-parallel
            in_specs=in_specs,
            out_specs=pl.BlockSpec((1, z_p, Hf * Wf), lambda n: (n, 0, 0)),
        ),
        compiler_params=pltpu.CompilerParams(
            dimension_semantics=("parallel",)),
    )(*args)

    # drop channel padding; flatten in torch NCHW order (contiguous reshape).
    return out[:, :z, :].reshape(N, -1)


# ---------------------------------------------------------------------------
# Parameter init (matches nn.Conv2d default init bounds), packed layout.
# ---------------------------------------------------------------------------
def init_cnn_params(key, channels, layers, hidden_channels, output_channels):
    out_channels = [hidden_channels] * (layers - 1) + [output_channels]
    params = []
    c_in = channels
    for c_out in out_channels:
        for j in range(2):
            cin = c_in if j == 0 else c_out
            key, k_w, k_b = jax.random.split(key, 3)
            bound = 1.0 / float(cin * 9) ** 0.5
            w = jax.random.uniform(k_w, (c_out, 9 * cin), jnp.float32,
                                   -bound, bound)
            b = jax.random.uniform(k_b, (c_out, 1), jnp.float32, -bound, bound)
            params.append(jnp.concatenate([w, b], axis=1))
        c_in = c_out
    return params


# ---------------------------------------------------------------------------
# Pure-JAX reference (numerical validation only).
# ---------------------------------------------------------------------------
def cnn_forward_ref(params, x_nchw):
    x = x_nchw.astype(jnp.float32)

    def conv(x, p):
        cout = p.shape[0]
        cin = (p.shape[1] - 1) // 9
        w = p[:, :9 * cin].reshape(cout, 3, 3, cin).transpose(0, 3, 1, 2)  # OIHW
        b = p[:, 9 * cin]
        y = lax.conv_general_dilated(
            x, w, (1, 1), "SAME",
            dimension_numbers=("NCHW", "OIHW", "NCHW"),
            precision=lax.Precision.HIGHEST)
        return jnp.maximum(y + b.reshape(1, -1, 1, 1), 0.0)

    def pool(x):
        return lax.reduce_window(x, -jnp.inf, lax.max,
                                 (1, 1, 2, 2), (1, 1, 2, 2), "VALID")

    for blk in range(len(params) // 2):
        x = pool(conv(conv(x, params[2 * blk]), params[2 * blk + 1]))
    return x.reshape(x.shape[0], -1)


# ---------------------------------------------------------------------------
if __name__ == "__main__":
    # Config consistent with CNN(channels=4, layers=2, inputImageDimension=16,
    #                            hiddenChannels=8, outputChannels=8)
    channels, layers, img_dim = 4, 2, 16
    hidden_channels, output_channels = 8, 8

    params = init_cnn_params(jax.random.PRNGKey(0), channels, layers,
                             hidden_channels, output_channels)
    x = jax.random.normal(jax.random.PRNGKey(0),
                          (2, channels, img_dim, img_dim), dtype=jnp.float32)

    expected_dim = int(output_channels * img_dim * img_dim / 4 ** layers)
    ref = jax.block_until_ready(cnn_forward_ref(params, x))

    # Exact-semantics check with f32 MXU inputs.
    fwd_f32 = jax.jit(functools.partial(cnn_forward, params,
                                        mxu_dtype=jnp.float32))
    out_f32 = jax.block_until_ready(fwd_f32(x))
    assert out_f32.shape == (2, expected_dim), (out_f32.shape, expected_dim)
    assert jnp.allclose(out_f32, ref, atol=1e-3, rtol=1e-3), \
        float(jnp.max(jnp.abs(out_f32 - ref)))

    # Default path: bf16 MXU inputs, f32 accumulation (looser tolerance by
    # design -- documented deviation from the torch f32 reference).
    fwd = jax.jit(functools.partial(cnn_forward, params))
    out = jax.block_until_ready(fwd(x))
    assert out.shape == (2, expected_dim), (out.shape, expected_dim)
    assert jnp.allclose(out, ref, atol=7e-2, rtol=7e-2), \
        float(jnp.max(jnp.abs(out - ref)))

    print("KERNEL_OK")
</pallas_src>

<mosaic_0001>
module attributes {stable_mosaic.version = 11 : i64} {
  func.func @kernel(%arg0: i32, %arg1: memref<1x8x256xf32, #tpu.memory_space<vmem>>, %arg2: memref<8x73xf32, #tpu.memory_space<vmem>>, %arg3: memref<8x73xf32, #tpu.memory_space<vmem>>, %arg4: memref<9x256xf32, #tpu.memory_space<vmem>>, %arg5: memref<256x128xf32, #tpu.memory_space<vmem>>, %arg6: memref<8x73xf32, #tpu.memory_space<vmem>>, %arg7: memref<8x73xf32, #tpu.memory_space<vmem>>, %arg8: memref<9x128xf32, #tpu.memory_space<vmem>>, %arg9: memref<128x16xf32, #tpu.memory_space<vmem>>, %arg10: memref<1x8x16xf32, #tpu.memory_space<vmem>>) attributes {dimension_semantics = [#tpu.dimension_semantics<parallel>], iteration_bounds = array<i64: 2>, scalar_prefetch = 0 : i64, scratch_operands = 0 : i64, tpu.core_type = #tpu.core_type<tc>, window_params = [{transform_indices = @transform_0, window_bounds = array<i64: 1, 8, 256>}, {pipeline_mode = #tpu.pipeline_mode<synchronous>, transform_indices = @transform_1, window_bounds = array<i64: 8, 73>}, {pipeline_mode = #tpu.pipeline_mode<synchronous>, transform_indices = @transform_2, window_bounds = array<i64: 8, 73>}, {pipeline_mode = #tpu.pipeline_mode<synchronous>, transform_indices = @transform_3, window_bounds = array<i64: 9, 256>}, {pipeline_mode = #tpu.pipeline_mode<synchronous>, transform_indices = @transform_4, window_bounds = array<i64: 256, 128>}, {pipeline_mode = #tpu.pipeline_mode<synchronous>, transform_indices = @transform_5, window_bounds = array<i64: 8, 73>}, {pipeline_mode = #tpu.pipeline_mode<synchronous>, transform_indices = @transform_6, window_bounds = array<i64: 8, 73>}, {pipeline_mode = #tpu.pipeline_mode<synchronous>, transform_indices = @transform_7, window_bounds = array<i64: 9, 128>}, {pipeline_mode = #tpu.pipeline_mode<synchronous>, transform_indices = @transform_8, window_bounds = array<i64: 128, 16>}, {transform_indices = @transform_9, window_bounds = array<i64: 1, 8, 16>}]} {
    %c0 = arith.constant 0 : index
    %c0_0 = arith.constant 0 : index
    %c0_1 = arith.constant 0 : index
    %0 = vector.load %arg1[%c0, %c0_0, %c0_1] : memref<1x8x256xf32, #tpu.memory_space<vmem>>, vector<1x8x256xf32>
    %1 = vector.shape_cast %0 : vector<1x8x256xf32> to vector<8x256xf32>
    %c17_i32 = arith.constant 17 : i32
    %2 = tpu.dynamic_rotate %1 by %c17_i32 dim 1 : vector<8x256xf32>, i32 -> vector<8x256xf32>
    %c0_2 = arith.constant 0 : index
    %c0_3 = arith.constant 0 : index
    %3 = vector.load %arg4[%c0_2, %c0_3] : memref<9x256xf32, #tpu.memory_space<vmem>>, vector<1x256xf32>
    %4 = vector.broadcast %3 : vector<1x256xf32> to vector<8x256xf32>
    %5 = arith.mulf %2, %4 : vector<8x256xf32>
    %c16_i32 = arith.constant 16 : i32
    %6 = tpu.dynamic_rotate %1 by %c16_i32 dim 1 : vector<8x256xf32>, i32 -> vector<8x256xf32>
    %c1 = arith.constant 1 : index
    %c0_4 = arith.constant 0 : index
    %7 = vector.load %arg4[%c1, %c0_4] : memref<9x256xf32, #tpu.memory_space<vmem>>, vector<1x256xf32>
    %8 = vector.broadcast %7 : vector<1x256xf32> to vector<8x256xf32>
    %9 = arith.mulf %6, %8 : vector<8x256xf32>
    %c15_i32 = arith.constant 15 : i32
    %10 = tpu.dynamic_rotate %1 by %c15_i32 dim 1 : vector<8x256xf32>, i32 -> vector<8x256xf32>
    %c2 = arith.constant 2 : index
    %c0_5 = arith.constant 0 : index
    %11 = vector.load %arg4[%c2, %c0_5] : memref<9x256xf32, #tpu.memory_space<vmem>>, vector<1x256xf32>
    %12 = vector.broadcast %11 : vector<1x256xf32> to vector<8x256xf32>
    %13 = arith.mulf %10, %12 : vector<8x256xf32>
    %c1_i32 = arith.constant 1 : i32
    %14 = tpu.dynamic_rotate %1 by %c1_i32 dim 1 : vector<8x256xf32>, i32 -> vector<8x256xf32>
    %c3 = arith.constant 3 : index
    %c0_6 = arith.constant 0 : index
    %15 = vector.load %arg4[%c3, %c0_6] : memref<9x256xf32, #tpu.memory_space<vmem>>, vector<1x256xf32>
    %16 = vector.broadcast %15 : vector<1x256xf32> to vector<8x256xf32>
    %17 = arith.mulf %14, %16 : vector<8x256xf32>
    %c255_i32 = arith.constant 255 : i32
    %18 = tpu.dynamic_rotate %1 by %c255_i32 dim 1 : vector<8x256xf32>, i32 -> vector<8x256xf32>
    %c5 = arith.constant 5 : index
    %c0_7 = arith.constant 0 : index
    %19 = vector.load %arg4[%c5, %c0_7] : memref<9x256xf32, #tpu.memory_space<vmem>>, vector<1x256xf32>
    %20 = vector.broadcast %19 : vector<1x256xf32> to vector<8x256xf32>
    %21 = arith.mulf %18, %20 : vector<8x256xf32>
    %c241_i32 = arith.constant 241 : i32
    %22 = tpu.dynamic_rotate %1 by %c241_i32 dim 1 : vector<8x256xf32>, i32 -> vector<8x256xf32>
    %c6 = arith.constant 6 : index
    %c0_8 = arith.constant 0 : index
    %23 = vector.load %arg4[%c6, %c0_8] : memref<9x256xf32, #tpu.memory_space<vmem>>, vector<1x256xf32>
    %24 = vector.broadcast %23 : vector<1x256xf32> to vector<8x256xf32>
    %25 = arith.mulf %22, %24 : vector<8x256xf32>
    %c240_i32 = arith.constant 240 : i32
    %26 = tpu.dynamic_rotate %1 by %c240_i32 dim 1 : vector<8x256xf32>, i32 -> vector<8x256xf32>
    %c7 = arith.constant 7 : index
    %c0_9 = arith.constant 0 : index
    %27 = vector.load %arg4[%c7, %c0_9] : memref<9x256xf32, #tpu.memory_space<vmem>>, vector<1x256xf32>
    %28 = vector.broadcast %27 : vector<1x256xf32> to vector<8x256xf32>
    %29 = arith.mulf %26, %28 : vector<8x256xf32>
    %c239_i32 = arith.constant 239 : i32
    %30 = tpu.dynamic_rotate %1 by %c239_i32 dim 1 : vector<8x256xf32>, i32 -> vector<8x256xf32>
    %c8 = arith.constant 8 : index
    %c0_10 = arith.constant 0 : index
    %31 = vector.load %arg4[%c8, %c0_10] : memref<9x256xf32, #tpu.memory_space<vmem>>, vector<1x256xf32>
    %32 = vector.broadcast %31 : vector<1x256xf32> to vector<8x256xf32>
    %33 = arith.mulf %30, %32 : vector<8x256xf32>
    %34 = tpu.concatenate %5, %9, %13, %17, %1, %21, %25, %29, %33 in 0 : vector<8x256xf32>, vector<8x256xf32>, vector<8x256xf32>, vector<8x256xf32>, vector<8x256xf32>, vector<8x256xf32>, vector<8x256xf32>, vector<8x256xf32>, vector<8x256xf32> -> vector<72x256xf32>
    %c0_11 = arith.constant 0 : index
    %c0_12 = arith.constant 0 : index
    %35 = vector.load %arg2[%c0_11, %c0_12] : memref<8x73xf32, #tpu.memory_space<vmem>>, vector<8x72xf32>
    %c0_13 = arith.constant 0 : index
    %c72 = arith.constant 72 : index
    %36 = vector.load %arg2[%c0_13, %c72] : memref<8x73xf32, #tpu.memory_space<vmem>>, vector<8x1xf32>
    %cst = arith.constant dense<0.000000e+00> : vector<8x256xf32>
    %37 = tpu.matmul %35, %34, %cst {dimension_numbers = #tpu.dot_dimension_numbers<[1], [0], [0], [1], [0, 0, 1, 1], [], []>} : vector<8x72xf32>, vector<72x256xf32>, vector<8x256xf32> -> vector<8x256xf32>
    %38 = vector.broadcast %36 : vector<8x1xf32> to vector<8x256xf32>
    %39 = arith.addf %37, %38 : vector<8x256xf32>
    %cst_14 = arith.constant 0.000000e+00 : f32
    %40 = vector.broadcast %cst_14 : f32 to vector<8x256xf32>
    %41 = arith.maximumf %39, %40 : vector<8x256xf32>
    %c17_i32_15 = arith.constant 17 : i32
    %42 = tpu.dynamic_rotate %41 by %c17_i32_15 dim 1 : vector<8x256xf32>, i32 -> vector<8x256xf32>
    %c0_16 = arith.constant 0 : index
    %c0_17 = arith.constant 0 : index
    %43 = vector.load %arg4[%c0_16, %c0_17] : memref<9x256xf32, #tpu.memory_space<vmem>>, vector<1x256xf32>
    %44 = vector.broadcast %43 : vector<1x256xf32> to vector<8x256xf32>
    %45 = arith.mulf %42, %44 : vector<8x256xf32>
    %c16_i32_18 = arith.constant 16 : i32
    %46 = tpu.dynamic_rotate %41 by %c16_i32_18 dim 1 : vector<8x256xf32>, i32 -> vector<8x256xf32>
    %c1_19 = arith.constant 1 : index
    %c0_20 = arith.constant 0 : index
    %47 = vector.load %arg4[%c1_19, %c0_20] : memref<9x256xf32, #tpu.memory_space<vmem>>, vector<1x256xf32>
    %48 = vector.broadcast %47 : vector<1x256xf32> to vector<8x256xf32>
    %49 = arith.mulf %46, %48 : vector<8x256xf32>
    %c15_i32_21 = arith.constant 15 : i32
    %50 = tpu.dynamic_rotate %41 by %c15_i32_21 dim 1 : vector<8x256xf32>, i32 -> vector<8x256xf32>
    %c2_22 = arith.constant 2 : index
    %c0_23 = arith.constant 0 : index
    %51 = vector.load %arg4[%c2_22, %c0_23] : memref<9x256xf32, #tpu.memory_space<vmem>>, vector<1x256xf32>
    %52 = vector.broadcast %51 : vector<1x256xf32> to vector<8x256xf32>
    %53 = arith.mulf %50, %52 : vector<8x256xf32>
    %c1_i32_24 = arith.constant 1 : i32
    %54 = tpu.dynamic_rotate %41 by %c1_i32_24 dim 1 : vector<8x256xf32>, i32 -> vector<8x256xf32>
    %c3_25 = arith.constant 3 : index
    %c0_26 = arith.constant 0 : index
    %55 = vector.load %arg4[%c3_25, %c0_26] : memref<9x256xf32, #tpu.memory_space<vmem>>, vector<1x256xf32>
    %56 = vector.broadcast %55 : vector<1x256xf32> to vector<8x256xf32>
    %57 = arith.mulf %54, %56 : vector<8x256xf32>
    %c255_i32_27 = arith.constant 255 : i32
    %58 = tpu.dynamic_rotate %41 by %c255_i32_27 dim 1 : vector<8x256xf32>, i32 -> vector<8x256xf32>
    %c5_28 = arith.constant 5 : index
    %c0_29 = arith.constant 0 : index
    %59 = vector.load %arg4[%c5_28, %c0_29] : memref<9x256xf32, #tpu.memory_space<vmem>>, vector<1x256xf32>
    %60 = vector.broadcast %59 : vector<1x256xf32> to vector<8x256xf32>
    %61 = arith.mulf %58, %60 : vector<8x256xf32>
    %c241_i32_30 = arith.constant 241 : i32
    %62 = tpu.dynamic_rotate %41 by %c241_i32_30 dim 1 : vector<8x256xf32>, i32 -> vector<8x256xf32>
    %c6_31 = arith.constant 6 : index
    %c0_32 = arith.constant 0 : index
    %63 = vector.load %arg4[%c6_31, %c0_32] : memref<9x256xf32, #tpu.memory_space<vmem>>, vector<1x256xf32>
    %64 = vector.broadcast %63 : vector<1x256xf32> to vector<8x256xf32>
    %65 = arith.mulf %62, %64 : vector<8x256xf32>
    %c240_i32_33 = arith.constant 240 : i32
    %66 = tpu.dynamic_rotate %41 by %c240_i32_33 dim 1 : vector<8x256xf32>, i32 -> vector<8x256xf32>
    %c7_34 = arith.constant 7 : index
    %c0_35 = arith.constant 0 : index
    %67 = vector.load %arg4[%c7_34, %c0_35] : memref<9x256xf32, #tpu.memory_space<vmem>>, vector<1x256xf32>
    %68 = vector.broadcast %67 : vector<1x256xf32> to vector<8x256xf32>
    %69 = arith.mulf %66, %68 : vector<8x256xf32>
    %c239_i32_36 = arith.constant 239 : i32
    %70 = tpu.dynamic_rotate %41 by %c239_i32_36 dim 1 : vector<8x256xf32>, i32 -> vector<8x256xf32>
    %c8_37 = arith.constant 8 : index
    %c0_38 = arith.constant 0 : index
    %71 = vector.load %arg4[%c8_37, %c0_38] : memref<9x256xf32, #tpu.memory_space<vmem>>, vector<1x256xf32>
    %72 = vector.broadcast %71 : vector<1x256xf32> to vector<8x256xf32>
    %73 = arith.mulf %70, %72 : vector<8x256xf32>
    %74 = tpu.concatenate %45, %49, %53, %57, %41, %61, %65, %69, %73 in 0 : vector<8x256xf32>, vector<8x256xf32>, vector<8x256xf32>, vector<8x256xf32>, vector<8x256xf32>, vector<8x256xf32>, vector<8x256xf32>, vector<8x256xf32>, vector<8x256xf32> -> vector<72x256xf32>
    %c0_39 = arith.constant 0 : index
    %c0_40 = arith.constant 0 : index
    %75 = vector.load %arg3[%c0_39, %c0_40] : memref<8x73xf32, #tpu.memory_space<vmem>>, vector<8x72xf32>
    %c0_41 = arith.constant 0 : index
    %c72_42 = arith.constant 72 : index
    %76 = vector.load %arg3[%c0_41, %c72_42] : memref<8x73xf32, #tpu.memory_space<vmem>>, vector<8x1xf32>
    %cst_43 = arith.constant dense<0.000000e+00> : vector<8x256xf32>
    %77 = tpu.matmul %75, %74, %cst_43 {dimension_numbers = #tpu.dot_dimension_numbers<[1], [0], [0], [1], [0, 0, 1, 1], [], []>} : vector<8x72xf32>, vector<72x256xf32>, vector<8x256xf32> -> vector<8x256xf32>
    %78 = vector.broadcast %76 : vector<8x1xf32> to vector<8x256xf32>
    %79 = arith.addf %77, %78 : vector<8x256xf32>
    %cst_44 = arith.constant 0.000000e+00 : f32
    %80 = vector.broadcast %cst_44 : f32 to vector<8x256xf32>
    %81 = arith.maximumf %79, %80 : vector<8x256xf32>
    %c255_i32_45 = arith.constant 255 : i32
    %82 = tpu.dynamic_rotate %81 by %c255_i32_45 dim 1 : vector<8x256xf32>, i32 -> vector<8x256xf32>
    %83 = arith.maximumf %81, %82 : vector<8x256xf32>
    %c240_i32_46 = arith.constant 240 : i32
    %84 = tpu.dynamic_rotate %83 by %c240_i32_46 dim 1 : vector<8x256xf32>, i32 -> vector<8x256xf32>
    %85 = arith.maximumf %83, %84 : vector<8x256xf32>
    %c0_47 = arith.constant 0 : index
    %c0_48 = arith.constant 0 : index
    %86 = vector.load %arg5[%c0_47, %c0_48] : memref<256x128xf32, #tpu.memory_space<vmem>>, vector<256x128xf32>
    %cst_49 = arith.constant dense<0.000000e+00> : vector<8x128xf32>
    %87 = tpu.matmul %85, %86, %cst_49 {dimension_numbers = #tpu.dot_dimension_numbers<[1], [0], [0], [1], [0, 0, 1, 1], [], []>} : vector<8x256xf32>, vector<256x128xf32>, vector<8x128xf32> -> vector<8x128xf32>
    %c9_i32 = arith.constant 9 : i32
    %88 = tpu.dynamic_rotate %87 by %c9_i32 dim 1 : vector<8x128xf32>, i32 -> vector<8x128xf32>
    %c0_50 = arith.constant 0 : index
    %c0_51 = arith.constant 0 : index
    %89 = vector.load %arg8[%c0_50, %c0_51] : memref<9x128xf32, #tpu.memory_space<vmem>>, vector<1x128xf32>
    %90 = vector.broadcast %89 : vector<1x128xf32> to vector<8x128xf32>
    %91 = arith.mulf %88, %90 : vector<8x128xf32>
    %c8_i32 = arith.constant 8 : i32
    %92 = tpu.dynamic_rotate %87 by %c8_i32 dim 1 : vector<8x128xf32>, i32 -> vector<8x128xf32>
    %c1_52 = arith.constant 1 : index
    %c0_53 = arith.constant 0 : index
    %93 = vector.load %arg8[%c1_52, %c0_53] : memref<9x128xf32, #tpu.memory_space<vmem>>, vector<1x128xf32>
    %94 = vector.broadcast %93 : vector<1x128xf32> to vector<8x128xf32>
    %95 = arith.mulf %92, %94 : vector<8x128xf32>
    %c7_i32 = arith.constant 7 : i32
    %96 = tpu.dynamic_rotate %87 by %c7_i32 dim 1 : vector<8x128xf32>, i32 -> vector<8x128xf32>
    %c2_54 = arith.constant 2 : index
    %c0_55 = arith.constant 0 : index
    %97 = vector.load %arg8[%c2_54, %c0_55] : memref<9x128xf32, #tpu.memory_space<vmem>>, vector<1x128xf32>
    %98 = vector.broadcast %97 : vector<1x128xf32> to vector<8x128xf32>
    %99 = arith.mulf %96, %98 : vector<8x128xf32>
    %c1_i32_56 = arith.constant 1 : i32
    %100 = tpu.dynamic_rotate %87 by %c1_i32_56 dim 1 : vector<8x128xf32>, i32 -> vector<8x128xf32>
    %c3_57 = arith.constant 3 : index
    %c0_58 = arith.constant 0 : index
    %101 = vector.load %arg8[%c3_57, %c0_58] : memref<9x128xf32, #tpu.memory_space<vmem>>, vector<1x128xf32>
    %102 = vector.broadcast %101 : vector<1x128xf32> to vector<8x128xf32>
    %103 = arith.mulf %100, %102 : vector<8x128xf32>
    %c127_i32 = arith.constant 127 : i32
    %104 = tpu.dynamic_rotate %87 by %c127_i32 dim 1 : vector<8x128xf32>, i32 -> vector<8x128xf32>
    %c5_59 = arith.constant 5 : index
    %c0_60 = arith.constant 0 : index
    %105 = vector.load %arg8[%c5_59, %c0_60] : memref<9x128xf32, #tpu.memory_space<vmem>>, vector<1x128xf32>
    %106 = vector.broadcast %105 : vector<1x128xf32> to vector<8x128xf32>
    %107 = arith.mulf %104, %106 : vector<8x128xf32>
    %c121_i32 = arith.constant 121 : i32
    %108 = tpu.dynamic_rotate %87 by %c121_i32 dim 1 : vector<8x128xf32>, i32 -> vector<8x128xf32>
    %c6_61 = arith.constant 6 : index
    %c0_62 = arith.constant 0 : index
    %109 = vector.load %arg8[%c6_61, %c0_62] : memref<9x128xf32, #tpu.memory_space<vmem>>, vector<1x128xf32>
    %110 = vector.broadcast %109 : vector<1x128xf32> to vector<8x128xf32>
    %111 = arith.mulf %108, %110 : vector<8x128xf32>
    %c120_i32 = arith.constant 120 : i32
    %112 = tpu.dynamic_rotate %87 by %c120_i32 dim 1 : vector<8x128xf32>, i32 -> vector<8x128xf32>
    %c7_63 = arith.constant 7 : index
    %c0_64 = arith.constant 0 : index
    %113 = vector.load %arg8[%c7_63, %c0_64] : memref<9x128xf32, #tpu.memory_space<vmem>>, vector<1x128xf32>
    %114 = vector.broadcast %113 : vector<1x128xf32> to vector<8x128xf32>
    %115 = arith.mulf %112, %114 : vector<8x128xf32>
    %c119_i32 = arith.constant 119 : i32
    %116 = tpu.dynamic_rotate %87 by %c119_i32 dim 1 : vector<8x128xf32>, i32 -> vector<8x128xf32>
    %c8_65 = arith.constant 8 : index
    %c0_66 = arith.constant 0 : index
    %117 = vector.load %arg8[%c8_65, %c0_66] : memref<9x128xf32, #tpu.memory_space<vmem>>, vector<1x128xf32>
    %118 = vector.broadcast %117 : vector<1x128xf32> to vector<8x128xf32>
    %119 = arith.mulf %116, %118 : vector<8x128xf32>
    %120 = tpu.concatenate %91, %95, %99, %103, %87, %107, %111, %115, %119 in 0 : vector<8x128xf32>, vector<8x128xf32>, vector<8x128xf32>, vector<8x128xf32>, vector<8x128xf32>, vector<8x128xf32>, vector<8x128xf32>, vector<8x128xf32>, vector<8x128xf32> -> vector<72x128xf32>
    %c0_67 = arith.constant 0 : index
    %c0_68 = arith.constant 0 : index
    %121 = vector.load %arg6[%c0_67, %c0_68] : memref<8x73xf32, #tpu.memory_space<vmem>>, vector<8x72xf32>
    %c0_69 = arith.constant 0 : index
    %c72_70 = arith.constant 72 : index
    %122 = vector.load %arg6[%c0_69, %c72_70] : memref<8x73xf32, #tpu.memory_space<vmem>>, vector<8x1xf32>
    %cst_71 = arith.constant dense<0.000000e+00> : vector<8x128xf32>
    %123 = tpu.matmul %121, %120, %cst_71 {dimension_numbers = #tpu.dot_dimension_numbers<[1], [0], [0], [1], [0, 0, 1, 1], [], []>} : vector<8x72xf32>, vector<72x128xf32>, vector<8x128xf32> -> vector<8x128xf32>
    %124 = vector.broadcast %122 : vector<8x1xf32> to vector<8x128xf32>
    %125 = arith.addf %123, %124 : vector<8x128xf32>
    %cst_72 = arith.constant 0.000000e+00 : f32
    %126 = vector.broadcast %cst_72 : f32 to vector<8x128xf32>
    %127 = arith.maximumf %125, %126 : vector<8x128xf32>
    %c9_i32_73 = arith.constant 9 : i32
    %128 = tpu.dynamic_rotate %127 by %c9_i32_73 dim 1 : vector<8x128xf32>, i32 -> vector<8x128xf32>
    %c0_74 = arith.constant 0 : index
    %c0_75 = arith.constant 0 : index
    %129 = vector.load %arg8[%c0_74, %c0_75] : memref<9x128xf32, #tpu.memory_space<vmem>>, vector<1x128xf32>
    %130 = vector.broadcast %129 : vector<1x128xf32> to vector<8x128xf32>
    %131 = arith.mulf %128, %130 : vector<8x128xf32>
    %c8_i32_76 = arith.constant 8 : i32
    %132 = tpu.dynamic_rotate %127 by %c8_i32_76 dim 1 : vector<8x128xf32>, i32 -> vector<8x128xf32>
    %c1_77 = arith.constant 1 : index
    %c0_78 = arith.constant 0 : index
    %133 = vector.load %arg8[%c1_77, %c0_78] : memref<9x128xf32, #tpu.memory_space<vmem>>, vector<1x128xf32>
    %134 = vector.broadcast %133 : vector<1x128xf32> to vector<8x128xf32>
    %135 = arith.mulf %132, %134 : vector<8x128xf32>
    %c7_i32_79 = arith.constant 7 : i32
    %136 = tpu.dynamic_rotate %127 by %c7_i32_79 dim 1 : vector<8x128xf32>, i32 -> vector<8x128xf32>
    %c2_80 = arith.constant 2 : index
    %c0_81 = arith.constant 0 : index
    %137 = vector.load %arg8[%c2_80, %c0_81] : memref<9x128xf32, #tpu.memory_space<vmem>>, vector<1x128xf32>
    %138 = vector.broadcast %137 : vector<1x128xf32> to vector<8x128xf32>
    %139 = arith.mulf %136, %138 : vector<8x128xf32>
    %c1_i32_82 = arith.constant 1 : i32
    %140 = tpu.dynamic_rotate %127 by %c1_i32_82 dim 1 : vector<8x128xf32>, i32 -> vector<8x128xf32>
    %c3_83 = arith.constant 3 : index
    %c0_84 = arith.constant 0 : index
    %141 = vector.load %arg8[%c3_83, %c0_84] : memref<9x128xf32, #tpu.memory_space<vmem>>, vector<1x128xf32>
    %142 = vector.broadcast %141 : vector<1x128xf32> to vector<8x128xf32>
    %143 = arith.mulf %140, %142 : vector<8x128xf32>
    %c127_i32_85 = arith.constant 127 : i32
    %144 = tpu.dynamic_rotate %127 by %c127_i32_85 dim 1 : vector<8x128xf32>, i32 -> vector<8x128xf32>
    %c5_86 = arith.constant 5 : index
    %c0_87 = arith.constant 0 : index
    %145 = vector.load %arg8[%c5_86, %c0_87] : memref<9x128xf32, #tpu.memory_space<vmem>>, vector<1x128xf32>
    %146 = vector.broadcast %145 : vector<1x128xf32> to vector<8x128xf32>
    %147 = arith.mulf %144, %146 : vector<8x128xf32>
    %c121_i32_88 = arith.constant 121 : i32
    %148 = tpu.dynamic_rotate %127 by %c121_i32_88 dim 1 : vector<8x128xf32>, i32 -> vector<8x128xf32>
    %c6_89 = arith.constant 6 : index
    %c0_90 = arith.constant 0 : index
    %149 = vector.load %arg8[%c6_89, %c0_90] : memref<9x128xf32, #tpu.memory_space<vmem>>, vector<1x128xf32>
    %150 = vector.broadcast %149 : vector<1x128xf32> to vector<8x128xf32>
    %151 = arith.mulf %148, %150 : vector<8x128xf32>
    %c120_i32_91 = arith.constant 120 : i32
    %152 = tpu.dynamic_rotate %127 by %c120_i32_91 dim 1 : vector<8x128xf32>, i32 -> vector<8x128xf32>
    %c7_92 = arith.constant 7 : index
    %c0_93 = arith.constant 0 : index
    %153 = vector.load %arg8[%c7_92, %c0_93] : memref<9x128xf32, #tpu.memory_space<vmem>>, vector<1x128xf32>
    %154 = vector.broadcast %153 : vector<1x128xf32> to vector<8x128xf32>
    %155 = arith.mulf %152, %154 : vector<8x128xf32>
    %c119_i32_94 = arith.constant 119 : i32
    %156 = tpu.dynamic_rotate %127 by %c119_i32_94 dim 1 : vector<8x128xf32>, i32 -> vector<8x128xf32>
    %c8_95 = arith.constant 8 : index
    %c0_96 = arith.constant 0 : index
    %157 = vector.load %arg8[%c8_95, %c0_96] : memref<9x128xf32, #tpu.memory_space<vmem>>, vector<1x128xf32>
    %158 = vector.broadcast %157 : vector<1x128xf32> to vector<8x128xf32>
    %159 = arith.mulf %156, %158 : vector<8x128xf32>
    %160 = tpu.concatenate %131, %135, %139, %143, %127, %147, %151, %155, %159 in 0 : vector<8x128xf32>, vector<8x128xf32>, vector<8x128xf32>, vector<8x128xf32>, vector<8x128xf32>, vector<8x128xf32>, vector<8x128xf32>, vector<8x128xf32>, vector<8x128xf32> -> vector<72x128xf32>
    %c0_97 = arith.constant 0 : index
    %c0_98 = arith.constant 0 : index
    %161 = vector.load %arg7[%c0_97, %c0_98] : memref<8x73xf32, #tpu.memory_space<vmem>>, vector<8x72xf32>
    %c0_99 = arith.constant 0 : index
    %c72_100 = arith.constant 72 : index
    %162 = vector.load %arg7[%c0_99, %c72_100] : memref<8x73xf32, #tpu.memory_space<vmem>>, vector<8x1xf32>
    %cst_101 = arith.constant dense<0.000000e+00> : vector<8x128xf32>
    %163 = tpu.matmul %161, %160, %cst_101 {dimension_numbers = #tpu.dot_dimension_numbers<[1], [0], [0], [1], [0, 0, 1, 1], [], []>} : vector<8x72xf32>, vector<72x128xf32>, vector<8x128xf32> -> vector<8x128xf32>
    %164 = vector.broadcast %162 : vector<8x1xf32> to vector<8x128xf32>
    %165 = arith.addf %163, %164 : vector<8x128xf32>
    %cst_102 = arith.constant 0.000000e+00 : f32
    %166 = vector.broadcast %cst_102 : f32 to vector<8x128xf32>
    %167 = arith.maximumf %165, %166 : vector<8x128xf32>
    %c127_i32_103 = arith.constant 127 : i32
    %168 = tpu.dynamic_rotate %167 by %c127_i32_103 dim 1 : vector<8x128xf32>, i32 -> vector<8x128xf32>
    %169 = arith.maximumf %167, %168 : vector<8x128xf32>
    %c120_i32_104 = arith.constant 120 : i32
    %170 = tpu.dynamic_rotate %169 by %c120_i32_104 dim 1 : vector<8x128xf32>, i32 -> vector<8x128xf32>
    %171 = arith.maximumf %169, %170 : vector<8x128xf32>
    %c0_105 = arith.constant 0 : index
    %c0_106 = arith.constant 0 : index
    %172 = vector.load %arg9[%c0_105, %c0_106] : memref<128x16xf32, #tpu.memory_space<vmem>>, vector<128x16xf32>
    %cst_107 = arith.constant dense<0.000000e+00> : vector<8x16xf32>
    %173 = tpu.matmul %171, %172, %cst_107 {dimension_numbers = #tpu.dot_dimension_numbers<[1], [0], [0], [1], [0, 0, 1, 1], [], []>} : vector<8x128xf32>, vector<128x16xf32>, vector<8x16xf32> -> vector<8x16xf32>
    %174 = vector.shape_cast %173 : vector<8x16xf32> to vector<1x8x16xf32>
    %c0_108 = arith.constant 0 : index
    %c0_109 = arith.constant 0 : index
    %c0_110 = arith.constant 0 : index
    %175 = vector.load %arg10[%c0_108, %c0_109, %c0_110] : memref<1x8x16xf32, #tpu.memory_space<vmem>>, vector<1x8x16xf32>
    tpu.vector_store %arg10[%c0_108, %c0_109, %c0_110], %174 {strides = array<i32>} : memref<1x8x16xf32, #tpu.memory_space<vmem>>, vector<1x8x16xf32>,
    return
  }
  func.func @transform_0(%arg0: i32) -> (i32, i32, i32) {
    %c0_i32 = arith.constant 0 : i32
    %c0_i32_0 = arith.constant 0 : i32
    %c0_i32_1 = arith.constant 0 : i32
    return %arg0, %c0_i32, %c0_i32_0 : i32, i32, i32
  }
  func.func @transform_1(%arg0: i32) -> (i32, i32) {
    %c0_i32 = arith.constant 0 : i32
    %c0_i32_0 = arith.constant 0 : i32
    %c0_i32_1 = arith.constant 0 : i32
    return %c0_i32, %c0_i32_0 : i32, i32
  }
  func.func @transform_2(%arg0: i32) -> (i32, i32) {
    %c0_i32 = arith.constant 0 : i32
    %c0_i32_0 = arith.constant 0 : i32
    %c0_i32_1 = arith.constant 0 : i32
    return %c0_i32, %c0_i32_0 : i32, i32
  }
  func.func @transform_3(%arg0: i32) -> (i32, i32) {
    %c0_i32 = arith.constant 0 : i32
    %c0_i32_0 = arith.constant 0 : i32
    %c0_i32_1 = arith.constant 0 : i32
    return %c0_i32, %c0_i32_0 : i32, i32
  }
  func.func @transform_4(%arg0: i32) -> (i32, i32) {
    %c0_i32 = arith.constant 0 : i32
    %c0_i32_0 = arith.constant 0 : i32
    %c0_i32_1 = arith.constant 0 : i32
    return %c0_i32, %c0_i32_0 : i32, i32
  }
  func.func @transform_5(%arg0: i32) -> (i32, i32) {
    %c0_i32 = arith.constant 0 : i32
    %c0_i32_0 = arith.constant 0 : i32
    %c0_i32_1 = arith.constant 0 : i32
    return %c0_i32, %c0_i32_0 : i32, i32
  }
  func.func @transform_6(%arg0: i32) -> (i32, i32) {
    %c0_i32 = arith.constant 0 : i32
    %c0_i32_0 = arith.constant 0 : i32
    %c0_i32_1 = arith.constant 0 : i32
    return %c0_i32, %c0_i32_0 : i32, i32
  }
  func.func @transform_7(%arg0: i32) -> (i32, i32) {
    %c0_i32 = arith.constant 0 : i32
    %c0_i32_0 = arith.constant 0 : i32
    %c0_i32_1 = arith.constant 0 : i32
    return %c0_i32, %c0_i32_0 : i32, i32
  }
  func.func @transform_8(%arg0: i32) -> (i32, i32) {
    %c0_i32 = arith.constant 0 : i32
    %c0_i32_0 = arith.constant 0 : i32
    %c0_i32_1 = arith.constant 0 : i32
    return %c0_i32, %c0_i32_0 : i32, i32
  }
  func.func @transform_9(%arg0: i32) -> (i32, i32, i32) {
    %c0_i32 = arith.constant 0 : i32
    %c0_i32_0 = arith.constant 0 : i32
    %c0_i32_1 = arith.constant 0 : i32
    return %arg0, %c0_i32, %c0_i32_0 : i32, i32, i32
  }
}

</mosaic_0001>

<bundles_post_ra>
// kernel: cnn_forward.1
= control target key start
LH: loop header
LB: loop body
LE: loop exit
PB: predicated region body
PF: predicated region fallthrough
CT: control target
= control target key end

     0   :  { %14 = vsyncpa [#allocation3], 0  ;;  %s1730_s30 = smov 0   ;;  %s2201_s0 = inlined_call_operand.vmem [shape: f32[2,8,256], index: 0, kind: input, shape index: {}]   ;;  %s2202_s1 = inlined_call_operand.vmem [shape: f32[8,73], index: 1, kind: input, shape index: {}]   ;;  %s2203_s2 = inlined_call_operand.vmem [shape: f32[8,73], index: 2, kind: input, shape index: {}]   ;;  %s2204_s3 = inlined_call_operand.vmem [shape: f32[9,256], index: 3, kind: input, shape index: {}]   ;;  %s2205_s4 = inlined_call_operand.hbm [shape: f32[256,128], index: 4, kind: input, shape index: {}]   ;;  %s2206_s5 = inlined_call_operand.vmem [shape: f32[8,73], index: 5, kind: input, shape index: {}]   ;;  %s2207_s6 = inlined_call_operand.vmem [shape: f32[8,73], index: 6, kind: input, shape index: {}]   ;;  %s2208_s7 = inlined_call_operand.vmem [shape: f32[9,128], index: 7, kind: input, shape index: {}]   ;;  %s2209_s8 = inlined_call_operand.vmem [shape: f32[128,16], index: 8, kind: input, shape index: {}]   ;;  %s2210_s9 = inlined_call_operand.vmem [shape: f32[2,8,16], index: 9, kind: output, shape index: {}]  }
   0x1 LB: > { %s1736_s10 = sadd.s32 4294967295, %s1657_s30   ;;  %p1277_p0 = scmp.ge.s32.totalorder %s1657_s30, 1  ;;  %s1657_s30 = sphi %s1730_s30, %s20_s30  }
   0x2   : > { %p245_p1 = scmp.lt.s32.totalorder %s1657_s30, 3  ;;  %s1659_s11 = smov [#allocation2]  }
   0x3   : > { %s266_s12 = sshll.u32 %s1659_s11, 4  ;;  %p2211_p3 = scmp.eq.s32.totalorder %s1736_s10, 0  ;;  %s267_s12 = int_to_ptr.vmem [resolvable:$true] %s266_s12 }
   0x4   : > { %p1740_p2 = pnand %p1277_p0, %p245_p1  ;;  %s1619_s17 = scalar_lea.hbm %s2205_s4, 4096 }
   0x5   : > { %p1620_p6 = scmp.ne.s32.totalorder %s2205_s4, %s1619_s17  ;;  %p1626_p10 = scmp.lt.u32.totalorder %s1619_s17, %s2205_s4 }
   0x6   : > { %s2213_s13 = scalar_select %p1740_p2, 1, 0 }
   0x7   : > { %p1572_p4 = pneg %p1740_p2 }
   0x9   : > { %p1749_p5 = pnand %p2211_p3, %p1572_p4 }
   0xb   : > { %p1621_p7 = pneg %p1749_p5 }
   0xd   : > { %p1622_p8 = pnand %p1621_p7, %p1620_p6 }
   0xf   : > { %p1623_p9 = pneg %p1622_p8 }
  0x11   : > { %p1628_p11 = pnand %p1626_p10, %p1623_p9 }
  0x13   : > { %1631 = shalt.err (!%p1628_p11)
}
  0x14   : > { %s1632_s22 = scalar_lea.vmem %s267_s12, 4096  ;;  %p1640_p1 = scmp.lt.s32.totalorder %s267_s12, %s267_s12 }
  0x15   : > { %p1633_p12 = scmp.ne.s32.totalorder %s267_s12, %s1632_s22  ;;  %p1641_p4 = scmp.lt.s32.totalorder %s1632_s22, %s1632_s22 }
  0x17   : > { %p1635_p13 = pnand %p1633_p12, %p1621_p7  ;;  %p1642_p3 = por %p1641_p4, %p1640_p1 }
  0x19   : > { %p1636_p0 = pneg %p1635_p13 }
  0x1b   : > { %p1643_p2 = pnand %p1642_p3, %p1636_p0 }
  0x1d   : > { %1646 = shalt.err (!%p1643_p2)
}
  0x1e   : > { %s1660_s23 = smov 128   ;;  %s1661_s24 = smov 8  }
  0x1f   : > { %1575 = dma.hbm_to_vmem [thread:$0]  (!%p1749_p5), %s2205_s4, 4096, %s267_s12, [#allocation3], %s1660_s23, %s1660_s23, %s1661_s24  }
  0x20   : > { %p2215_p6 = scmp.ne.s32.totalorder %s2213_s13, 0 }
  0x21   : > { %p2216_p8 = scmp.eq.s32.totalorder (!%p2215_p6), %s1736_s10, 0 }
  0x22   : > { %302 = sbr.rel (%p2215_p6) target bundleno = 2396 (0x95c), region = 56 }
  0x29   : > { %1652 = dma.done.wait (%p2216_p8), [#allocation3], 4096   ;;  %p2217_p7 = pmov %p2216_p8 }
  0x2a   : > { %p337_p2 = scmp.lt.s32.totalorder %s1736_s10, 1  ;;  %s1662_s12 = smov 16   ;;  %v1668_v2 = vmov 0.0   ;;  %v1669_v3 = vmov 72   ;;  %v1823_v4 = vld [vmem:[%s2202_s1] sm:$0xff]  ;;  %v352_v5 = vlaneseq  ;;  %vm531_vm8 = vcmask 588800  }
  0x2b   : > { %1654 = vsyncadd (%p2217_p7), [#allocation3], 4294963200  ;;  %s1663_s13 = smov 17   ;;  %s1664_s14 = smov 15   ;;  %598 = vmatprep.mubr.f32.mxu1 %v1668_v2  ;;  %1607 = vset.pattern.permute.xlu0 %v1669_v3  ;;  %vm1676_vm9 = vmmov 0   ;;  %vm1208_vm10 = vcmask 130048  }
  0x2c   : > { %s2219_s10 = smov (!%p337_p2, %s1736_s10), 1  ;;  %s1665_s15 = smov 1   ;;  %1618 = vset.pattern.permute.xlu1 %v1669_v3  ;;  %v360_v6 = vshrl.u32 %v352_v5, 7  ;;  %v1826_v7 = vand.u32 127, %v352_v5 }
  0x2d   : > { %s1306_s27 = sshll.u32 %s2219_s10, 4  ;;  %s1666_s16 = smov 127   ;;  %v1285_v10 = vld [vmem:[%s2204_s3 + $0x1] ss:$8 sm:$0x3] }
  0x2e   : > { %s341_s11 = scalar_lea.vmem %s2201_s0, %s1306_s27  ;;  %s1667_s17 = smov 113   ;;  %v1828_v8 = vsub.s32 0, %v360_v6  ;;  %v1830_v9 = vsub.s32 1, %v360_v6  ;;  %v357_v11 = vld [vmem:[%s2204_s3] ss:$8 sm:$0x3] }
  0x2f   : > { %v1783_v0 = vld [vmem:[%s341_s11] sm:$0xff]  ;;  %v1789_v1 = vld [vmem:[%s341_s11 + $0x8] sm:$0xff]  ;;  %s1670_s18 = smov 112   ;;  %s1671_s19 = smov 111   ;;  %vm375_vm0 = vcmp.lt.s32.totalorder %v1826_v7, 16  ;;  %vm354_vm1 = vcmp.lt.s32.totalorder %v1826_v7, 17 }
  0x30   : > { %371 = vrot.lane.b32.xlu1 %v1783_v0, %s1662_s12  ;;  %348 = vrot.lane.b32.xlu0 %v1783_v0, %s1663_s13  ;;  %v1841_v14 = vrot.slane %v1285_v10, %v1828_v8  ;;  %v1844_v15 = vrot.slane %v357_v11, %v1828_v8  ;;  %v1847_v16 = vrot.slane %v357_v11, %v1830_v9  ;;  %v1286_v28 = vld [vmem:[%s2204_s3 + $0x2] ss:$8 sm:$0x3]  ;;  %v1287_v29 = vld [vmem:[%s2204_s3 + $0x3] ss:$8 sm:$0x3] }
  0x31   : > { %v1850_v17 = vrot.slane %v1285_v10, %v1830_v9  ;;  %vm397_vm2 = vcmp.lt.s32.totalorder %v1826_v7, 15  ;;  %vm419_vm3 = vcmp.lt.s32.totalorder %v1826_v7, 1  ;;  %v1873_v34 = vrot.slane %v1286_v28, %v1828_v8  ;;  %v1288_v38 = vld [vmem:[%s2204_s3 + $0x5] ss:$8 sm:$0x3]  ;;  %s1678_s27 = smov 119  }
  0x32   : > { %v1876_v35 = vrot.slane %v1286_v28, %v1830_v9  ;;  %v1879_v36 = vrot.slane %v1287_v29, %v1828_v8  ;;  %v1882_v37 = vrot.slane %v1287_v29, %v1830_v9  ;;  %vm441_vm4 = vcmp.lt.s32.totalorder %v1826_v7, 127  ;;  %v1289_v59 = vld [vmem:[%s2204_s3 + $0x6] ss:$8 sm:$0x3]  ;;  %s1679_s28 = smov 120   ;;  %s1284_s24 = sshll.u32 %s2219_s10, 3 }
  0x33   : > { %v1897_v45 = vrot.slane %v1288_v38, %v1828_v8  ;;  %v1900_v46 = vrot.slane %v1288_v38, %v1830_v9  ;;  %v1290_v60 = vld [vmem:[%s2204_s3 + $0x7] ss:$8 sm:$0x3]  ;;  %vm463_vm5 = vcmp.lt.s32.totalorder %v1826_v7, 113  ;;  %v1922_v5 = vrot.slane %v1289_v59, %v1828_v8 }
  0x34   : > { %373 = vrot.lane.b32.xlu1 %v1789_v1, %s1662_s12  ;;  %350 = vrot.lane.b32.xlu0 %v1789_v1, %s1663_s13  ;;  %v1925_v6 = vrot.slane %v1289_v59, %v1830_v9  ;;  %vm485_vm6 = vcmp.lt.s32.totalorder %v1826_v7, 112  ;;  %v1929_v10 = vrot.slane %v1290_v60, %v1828_v8  ;;  %v1932_v11 = vrot.slane %v1290_v60, %v1830_v9 }
  0x35   : > { %vm507_vm7 = vcmp.lt.s32.totalorder %v1826_v7, 111  ;;  %v934_v7 = vld [vmem:[%s2206_s5] sm:$0xff] }
  0x38   : > { %395 = vrot.lane.b32.xlu1 %v1789_v1, %s1664_s14  ;;  %393 = vrot.lane.b32.xlu0 %v1783_v0, %s1664_s14 }
  0x3c   : > { %417 = vrot.lane.b32.xlu1 %v1789_v1, %s1665_s15  ;;  %415 = vrot.lane.b32.xlu0 %v1783_v0, %s1665_s15 }
  0x40   : > { %439 = vrot.lane.b32.xlu1 %v1789_v1, %s1666_s16  ;;  %437 = vrot.lane.b32.xlu0 %v1783_v0, %s1666_s16 }
  0x44   : > { %461 = vrot.lane.b32.xlu1 %v1789_v1, %s1667_s17  ;;  %459 = vrot.lane.b32.xlu0 %v1783_v0, %s1667_s17 }
  0x48   : > { %483 = vrot.lane.b32.xlu1 %v1789_v1, %s1670_s18  ;;  %481 = vrot.lane.b32.xlu0 %v1783_v0, %s1670_s18 }
  0x4c   : > { %505 = vrot.lane.b32.xlu1 %v1789_v1, %s1671_s19  ;;  %503 = vrot.lane.b32.xlu0 %v1783_v0, %s1671_s19 }
  0x50   : > { %528 = vperm.xlu0 %1607, %v1823_v4  }
  0xa2   : > { %v372_v12 = vpop.permute.xlu1 %371  ;;  %v349_v13 = vpop.permute.xlu0 %348 }
  0xa6   : > { %v374_v18 = vpop.permute.xlu1 %373  ;;  %v351_v19 = vpop.permute.xlu0 %350 }
  0xa7   : > { %v376_v20 = vsel %vm375_vm0, %v372_v12, %v374_v18  ;;  %v377_v21 = vsel %vm375_vm0, %v374_v18, %v372_v12  ;;  %v355_v22 = vsel %vm354_vm1, %v349_v13, %v351_v19  ;;  %v356_v23 = vsel %vm354_vm1, %v351_v19, %v349_v13 }
  0xa8   : > { %v391_v24 = vmul.f32 %v1841_v14, %v377_v21  ;;  %v369_v25 = vmul.f32 %v1844_v15, %v356_v23  ;;  %v370_v26 = vmul.f32 %v1847_v16, %v355_v22  ;;  %v392_v27 = vmul.f32 %v1850_v17, %v376_v20 }
  0xaa   : > { %v396_v30 = vpop.permute.xlu1 %395  ;;  %v394_v31 = vpop.permute.xlu0 %393  ;;  %v1456_v32 = vpack.c.bf16 %v392_v27, %v370_v26  ;;  %v1458_v33 = vpack.c.bf16 %v391_v24, %v369_v25 }
  0xab   : > { %v398_v39 = vsel %vm397_vm2, %v394_v31, %v396_v30  ;;  %v399_v40 = vsel %vm397_vm2, %v396_v30, %v394_v31 }
  0xac   : > { %1457 = vmatprep.subr.bf16.mxu1 %v1456_v32  ;;  %v413_v47 = vmul.f32 %v1873_v34, %v399_v40  ;;  %v414_v48 = vmul.f32 %v1876_v35, %v398_v39 }
  0xad   : > { %1459 = vmatpush1.bf16.msra.mxu1 %v1458_v33 }
  0xae   : > { %v418_v41 = vpop.permute.xlu1 %417  ;;  %v416_v42 = vpop.permute.xlu0 %415 }
  0xaf   : > { %v420_v43 = vsel %vm419_vm3, %v416_v42, %v418_v41  ;;  %v421_v44 = vsel %vm419_vm3, %v418_v41, %v416_v42 }
  0xb0   : > { %v435_v49 = vmul.f32 %v1879_v36, %v421_v44  ;;  %v436_v50 = vmul.f32 %v1882_v37, %v420_v43 }
  0xb2   : > { %v440_v51 = vpop.permute.xlu1 %439  ;;  %v438_v52 = vpop.permute.xlu0 %437  ;;  %v1460_v53 = vpack.c.bf16 %v436_v50, %v414_v48  ;;  %v1462_v54 = vpack.c.bf16 %v435_v49, %v413_v47 }
  0xb3   : > { %v442_v55 = vsel %vm441_vm4, %v438_v52, %v440_v51  ;;  %v443_v56 = vsel %vm441_vm4, %v440_v51, %v438_v52 }
  0xb4   : > { %v457_v57 = vmul.f32 %v1897_v45, %v442_v55  ;;  %v458_v58 = vmul.f32 %v1900_v46, %v443_v56  ;;  %1461 = vmatprep.subr.bf16.mxu1 %v1460_v53 }
  0xb5   : > { %1463 = vmatpush1.bf16.msra.mxu1 %v1462_v54 }
  0xb6   : > { %v462_v61 = vpop.permute.xlu1 %461  ;;  %v460_v62 = vpop.permute.xlu0 %459  ;;  %v1464_v63 = vpack.c.bf16 %v458_v58, %v1789_v1  ;;  %v1466_v3 = vpack.c.bf16 %v457_v57, %v1783_v0  ;;  %v1291_v1 = vld [vmem:[%s2204_s3 + $0x10] ss:$8 sm:$0x3] }
  0xb7   : > { %v464_v0 = vsel %vm463_vm5, %v460_v62, %v462_v61  ;;  %v465_v12 = vsel %vm463_vm5, %v462_v61, %v460_v62  ;;  %v1947_v21 = vrot.slane %v1291_v1, %v1830_v9  ;;  %v1954_v26 = vrot.slane %v1291_v1, %v1828_v8 }
  0xb8   : > { %1465 = vmatprep.subr.bf16.mxu1 %v1464_v63  ;;  %v479_v22 = vmul.f32 %v1922_v5, %v464_v0  ;;  %v480_v23 = vmul.f32 %v1925_v6, %v465_v12 }
  0xb9   : > { %1467 = vmatpush1.bf16.msra.mxu1 %v1466_v3 }
  0xba   : > { %v484_v13 = vpop.permute.xlu1 %483  ;;  %v482_v18 = vpop.permute.xlu0 %481 }
  0xbb   : > { %v486_v19 = vsel %vm485_vm6, %v482_v18, %v484_v13  ;;  %v487_v20 = vsel %vm485_vm6, %v484_v13, %v482_v18 }
  0xbc   : > { %v501_v24 = vmul.f32 %v1929_v10, %v486_v19  ;;  %v502_v25 = vmul.f32 %v1932_v11, %v487_v20 }
  0xbe   : > { %v506_v27 = vpop.permute.xlu1 %505  ;;  %v1468_v28 = vpack.c.bf16 %v502_v25, %v480_v23  ;;  %v504_v29 = vpop.permute.xlu0 %503  ;;  %v1470_v30 = vpack.c.bf16 %v501_v24, %v479_v22 }
  0xbf   : > { %v508_v31 = vsel %vm507_vm7, %v504_v29, %v506_v27  ;;  %v509_v9 = vsel %vm507_vm7, %v506_v27, %v504_v29 }
  0xc0   : > { %1469 = vmatprep.subr.bf16.mxu1 %v1468_v28  ;;  %v524_v32 = vmul.f32 %v1947_v21, %v509_v9  ;;  %v523_v33 = vmul.f32 %v1954_v26, %v508_v31 }
  0xc1   : > { %1471 = vmatpush1.bf16.msra.mxu1 %v1470_v30 }
  0xc2   : > { %550 = vmatprep.subr.mxu1 %v524_v32 }
  0xc5   : > { %551 = vmatpush1.msra.mxu1 %v523_v33 }
  0xc6   : > { %1292 = vmatmul.mubr.msk.f32.vlgmr.msra.gmra.mrb[0].mxu1 %vm531_vm8, %v1823_v4  ;;  %v1992_v4 = vld [vmem:[%s2203_s2] sm:$0xff] }
  0xc7   : > { %743 = vmatprep.mubr.f32.mxu1 %v1668_v2 }
  0xcf   : > { %v529_v8 = vpop.permute.xlu0 %528 }
 0x199   : > { %v600_v38 = vpop.f32.mrb[0].mxu1 }
 0x19a   : > { %v601_v39 = vadd.f32 %v600_v38, %v529_v8  ;;  %v602_v40 = vpop.f32.mrb[1].mxu1 }
 0x19b   : > { %v603_v42 = vadd.f32 %v602_v40, %v529_v8 }
 0x19c   : > { %v1965_v41 = vmax.f32 %v601_v39, 0.0 }
 0x19d   : > { %v606_v43 = vmax.f32 %v603_v42, 0.0 }
 0x19e   : > { %615 = vrot.lane.b32.xlu0 %v1965_v41, %s1662_s12  ;;  %607 = vrot.lane.b32.xlu1 %v1965_v41, %s1663_s13 }
 0x1a2   : > { %623 = vrot.lane.b32.xlu0 %v1965_v41, %s1664_s14  ;;  %609 = vrot.lane.b32.xlu1 %v606_v43, %s1663_s13 }
 0x1a6   : > { %631 = vrot.lane.b32.xlu0 %v1965_v41, %s1665_s15  ;;  %617 = vrot.lane.b32.xlu1 %v606_v43, %s1662_s12 }
 0x1aa   : > { %639 = vrot.lane.b32.xlu0 %v1965_v41, %s1666_s16  ;;  %625 = vrot.lane.b32.xlu1 %v606_v43, %s1664_s14  ;;  %s1673_s14 = smov 8  }
 0x1ae   : > { %647 = vrot.lane.b32.xlu0 %v1965_v41, %s1667_s17  ;;  %633 = vrot.lane.b32.xlu1 %v606_v43, %s1665_s15 }
 0x1b2   : > { %655 = vrot.lane.b32.xlu0 %v1965_v41, %s1670_s18  ;;  %641 = vrot.lane.b32.xlu1 %v606_v43, %s1666_s16 }
 0x1b6   : > { %663 = vrot.lane.b32.xlu0 %v1965_v41, %s1671_s19  ;;  %649 = vrot.lane.b32.xlu1 %v606_v43, %s1667_s17  ;;  %s1674_s17 = smov 9  }
 0x1ba   : > { %674 = vperm.xlu0 %1607, %v1992_v4   ;;  %657 = vrot.lane.b32.xlu1 %v606_v43, %s1670_s18 }
 0x1be   : > { %665 = vrot.lane.b32.xlu1 %v606_v43, %s1671_s19  ;;  %s1677_s19 = smov 121  }
 0x210   : > { %v616_v44 = vpop.permute.xlu0 %615  ;;  %v608_v47 = vpop.permute.xlu1 %607 }
 0x214   : > { %v624_v48 = vpop.permute.xlu0 %623  ;;  %v610_v49 = vpop.permute.xlu1 %609 }
 0x215   : > { %v611_v50 = vsel %vm354_vm1, %v608_v47, %v610_v49  ;;  %v612_v51 = vsel %vm354_vm1, %v610_v49, %v608_v47  ;;  %v785_v49 = vld [vmem:[#allocation2 + $0x88] sm:$0xff] }
 0x216   : > { %v613_v56 = vmul.f32 %v612_v51, %v1844_v15  ;;  %v614_v57 = vmul.f32 %v611_v50, %v1847_v16  ;;  %v768_v50 = vld [vmem:[#allocation2] sm:$0xff] }
 0x218   : > { %v632_v52 = vpop.permute.xlu0 %631  ;;  %v618_v53 = vpop.permute.xlu1 %617 }
 0x219   : > { %v619_v54 = vsel %vm375_vm0, %v616_v44, %v618_v53  ;;  %v620_v55 = vsel %vm375_vm0, %v618_v53, %v616_v44  ;;  %v786_v53 = vld [vmem:[#allocation2 + $0x90] sm:$0xff] }
 0x21a   : > { %v621_v58 = vmul.f32 %v620_v55, %v1841_v14  ;;  %v622_v59 = vmul.f32 %v619_v54, %v1850_v17 }
 0x21c   : > { %v1474_v60 = vpack.c.bf16 %v621_v58, %v613_v56  ;;  %v626_v61 = vpop.permute.xlu1 %625  ;;  %v1472_v62 = vpack.c.bf16 %v622_v59, %v614_v57  ;;  %v640_v63 = vpop.permute.xlu0 %639  ;;  %v770_v56 = vld [vmem:[#allocation2 + $0x10] sm:$0xff]  ;;  %v771_v57 = vld [vmem:[#allocation2 + $0x18] sm:$0xff]  ;;  %v788_v58 = vld [vmem:[#allocation2 + $0xa0] sm:$0xff] }
 0x21d   : > { %v627_v3 = vsel %vm397_vm2, %v624_v48, %v626_v61  ;;  %v628_v1 = vsel %vm397_vm2, %v626_v61, %v624_v48  ;;  %v784_v48 = vld [vmem:[#allocation2 + $0x80] sm:$0xff]  ;;  %v789_v59 = vld [vmem:[#allocation2 + $0xa8] sm:$0xff]  ;;  %v1494_v61 = vpack.c.bf16 %v771_v57, %v770_v56 }
 0x21e   : > { %1473 = vmatprep.subr.bf16.mxu1 %v1472_v62  ;;  %v629_v16 = vmul.f32 %v628_v1, %v1873_v34  ;;  %v630_v17 = vmul.f32 %v627_v3, %v1876_v35  ;;  %v1488_v51 = vpack.c.bf16 %v785_v49, %v784_v48  ;;  %v1496_v62 = vpack.c.bf16 %v789_v59, %v788_v58  ;;  %v773_v3 = vld [vmem:[#allocation2 + $0x28] sm:$0xff]  ;;  %v790_v1 = vld [vmem:[#allocation2 + $0xb0] sm:$0xff]  ;;  %v1297_v59 = vld [vmem:[%s2208_s7 + $0x3] ss:$0 sm:$0xff] }
 0x21f   : > { %1475 = vmatpush1.bf16.msra.mxu1 %v1474_v60 }
 0x220   : > { %v634_v0 = vpop.permute.xlu1 %633  ;;  %v648_v18 = vpop.permute.xlu0 %647  ;;  %1489 = vmatprep.subr.bf16.mxu0 %v1488_v51 }
 0x221   : > { %v635_v15 = vsel %vm419_vm3, %v632_v52, %v634_v0  ;;  %v636_v14 = vsel %vm419_vm3, %v634_v0, %v632_v52  ;;  %v769_v52 = vld [vmem:[#allocation2 + $0x8] sm:$0xff]  ;;  %v791_v0 = vld [vmem:[#allocation2 + $0xb8] sm:$0xff] }
 0x222   : > { %v637_v12 = vmul.f32 %v636_v14, %v1879_v36  ;;  %v638_v13 = vmul.f32 %v635_v15, %v1882_v37  ;;  %v1490_v55 = vpack.c.bf16 %v769_v52, %v768_v50  ;;  %v1500_v14 = vpack.c.bf16 %v791_v0, %v790_v1  ;;  %v1298_v0 = vld [vmem:[%s2208_s7 + $0x5] ss:$0 sm:$0xff] }
 0x224   : > { %v1478_v19 = vpack.c.bf16 %v637_v12, %v629_v16  ;;  %v642_v20 = vpop.permute.xlu1 %641  ;;  %v1476_v22 = vpack.c.bf16 %v638_v13, %v630_v17  ;;  %v656_v27 = vpop.permute.xlu0 %655  ;;  %1491 = vmatpush3.bf16.msra.mxu0 %v1490_v55  ;;  %v774_v16 = vld [vmem:[#allocation2 + $0x30] sm:$0xff]  ;;  %v775_v17 = vld [vmem:[#allocation2 + $0x38] sm:$0xff]  ;;  %v792_v12 = vld [vmem:[#allocation2 + $0xc0] sm:$0xff] }
 0x225   : > { %v643_v23 = vsel %vm441_vm4, %v640_v63, %v642_v20  ;;  %v644_v24 = vsel %vm441_vm4, %v642_v20, %v640_v63  ;;  %v772_v63 = vld [vmem:[#allocation2 + $0x20] sm:$0xff]  ;;  %v793_v13 = vld [vmem:[#allocation2 + $0xc8] sm:$0xff] }
 0x226   : > { %v645_v25 = vmul.f32 %v643_v23, %v1897_v45  ;;  %v646_v34 = vmul.f32 %v644_v24, %v1900_v46  ;;  %1477 = vmatprep.subr.bf16.mxu1 %v1476_v22  ;;  %v1498_v15 = vpack.c.bf16 %v773_v3, %v772_v63  ;;  %v776_v20 = vld [vmem:[#allocation2 + $0x40] sm:$0xff]  ;;  %v777_v22 = vld [vmem:[#allocation2 + $0x48] sm:$0xff]  ;;  %v794_v23 = vld [vmem:[#allocation2 + $0xd0] sm:$0xff] }
 0x227   : > { %1479 = vmatpush1.bf16.msra.mxu1 %v1478_v19  ;;  %v1504_v19 = vpack.c.bf16 %v793_v13, %v792_v12  ;;  %v795_v24 = vld [vmem:[#allocation2 + $0xd8] sm:$0xff]  ;;  %v1294_v55 = vld [vmem:[%s2208_s7] ss:$0 sm:$0xff]  ;;  %v1300_v13 = vld [vmem:[%s2208_s7 + $0x7] ss:$0 sm:$0xff] }
 0x228   : > { %v1482_v35 = vpack.c.bf16 %v645_v25, %v1965_v41  ;;  %v650_v36 = vpop.permute.xlu1 %649  ;;  %v1480_v37 = vpack.c.bf16 %v646_v34, %v606_v43  ;;  %v664_v8 = vpop.permute.xlu0 %663  ;;  %v1506_v25 = vpack.c.bf16 %v777_v22, %v776_v20  ;;  %v1508_v34 = vpack.c.bf16 %v795_v24, %v794_v23  ;;  %v1301_v24 = vld [vmem:[%s2208_s7 + $0x8] ss:$0 sm:$0xff] }
 0x229   : > { %v651_v28 = vsel %vm463_vm5, %v648_v18, %v650_v36  ;;  %v652_v29 = vsel %vm463_vm5, %v650_v36, %v648_v18  ;;  %v1502_v18 = vpack.c.bf16 %v775_v17, %v774_v16  ;;  %v779_v36 = vld [vmem:[#allocation2 + $0x58] sm:$0xff]  ;;  %v1299_v17 = vld [vmem:[%s2208_s7 + $0x6] ss:$0 sm:$0xff] }
 0x22a   : > { %1481 = vmatprep.subr.bf16.mxu1 %v1480_v37  ;;  %v653_v31 = vmul.f32 %v651_v28, %v1922_v5  ;;  %v654_v9 = vmul.f32 %v652_v29, %v1925_v6  ;;  %v796_v37 = vld [vmem:[#allocation2 + $0xe0] sm:$0xff] }
 0x22b   : > { %1483 = vmatpush1.bf16.msra.mxu1 %v1482_v35  ;;  %v778_v35 = vld [vmem:[#allocation2 + $0x50] sm:$0xff] }
 0x22c   : > { %v658_v30 = vpop.permute.xlu1 %657  ;;  %v1510_v28 = vpack.c.bf16 %v779_v36, %v778_v35 }
 0x22d   : > { %v659_v45 = vsel %vm485_vm6, %v656_v27, %v658_v30  ;;  %v660_v46 = vsel %vm485_vm6, %v658_v30, %v656_v27  ;;  %v797_v27 = vld [vmem:[#allocation2 + $0xe8] sm:$0xff]  ;;  %v780_v30 = vld [vmem:[#allocation2 + $0x60] sm:$0xff] }
 0x22e   : > { %v661_v32 = vmul.f32 %v659_v45, %v1929_v10  ;;  %v662_v33 = vmul.f32 %v660_v46, %v1932_v11  ;;  %v1512_v29 = vpack.c.bf16 %v797_v27, %v796_v37  ;;  %v781_v45 = vld [vmem:[#allocation2 + $0x68] sm:$0xff] }
 0x22f   : > { %v1514_v46 = vpack.c.bf16 %v781_v45, %v780_v30 }
 0x230   : > { %v1486_v38 = vpack.c.bf16 %v661_v32, %v653_v31  ;;  %v666_v39 = vpop.permute.xlu1 %665  ;;  %v1484_v40 = vpack.c.bf16 %v662_v33, %v654_v9  ;;  %v798_v31 = vld [vmem:[#allocation2 + $0xf0] sm:$0xff]  ;;  %v799_v9 = vld [vmem:[#allocation2 + $0xf8] sm:$0xff] }
 0x231   : > { %v668_v41 = vsel %vm507_vm7, %v666_v39, %v664_v8  ;;  %v667_v42 = vsel %vm507_vm7, %v664_v8, %v666_v39  ;;  %v1516_v32 = vpack.c.bf16 %v799_v9, %v798_v31  ;;  %v782_v33 = vld [vmem:[#allocation2 + $0x70] sm:$0xff]  ;;  %v783_v8 = vld [vmem:[#allocation2 + $0x78] sm:$0xff] }
 0x232   : > { %v670_v43 = vmul.f32 %v668_v41, %v1947_v21  ;;  %1485 = vmatprep.subr.bf16.mxu1 %v1484_v40  ;;  %v669_v5 = vmul.f32 %v667_v42, %v1954_v26  ;;  %v787_v26 = vld [vmem:[#allocation2 + $0x98] sm:$0xff] }
 0x233   : > { %1487 = vmatpush1.bf16.msra.mxu1 %v1486_v38  ;;  %v1518_v38 = vpack.c.bf16 %v783_v8, %v782_v33 }
 0x234   : > { %695 = vmatprep.subr.mxu1 %v670_v43 }
 0x237   : > { %696 = vmatpush1.msra.mxu1 %v669_v5 }
 0x238   : > { %1293 = vmatmul.mubr.msk.f32.vlgmr.msra.gmra.mrb[2].mxu1 %vm531_vm8, %v1992_v4  ;;  %v1492_v4 = vpack.c.bf16 %v787_v26, %v786_v53 }
 0x239   : > { %v675_v6 = vpop.permute.xlu0 %674  ;;  %1397 = vmatprep.mubr.msk.f32.mxu1 %vm1676_vm9, %v1668_v2 }
 0x23a   : > { %1493 = vmatprep.subr.bf16.mxu0 %v1492_v4 }
 0x23b   : > { %1495 = vmatpush3.bf16.msra.mxu0 %v1494_v61 }
 0x23c   : > { %1497 = vmatprep.subr.bf16.mxu0 %v1496_v62 }
 0x23f   : > { %1499 = vmatpush3.bf16.msra.mxu0 %v1498_v15 }
 0x240   : > { %1501 = vmatprep.subr.bf16.mxu0 %v1500_v14 }
 0x243   : > { %1503 = vmatpush3.bf16.msra.mxu0 %v1502_v18 }
 0x244   : > { %1505 = vmatprep.subr.bf16.mxu0 %v1504_v19 }
 0x247   : > { %1507 = vmatpush3.bf16.msra.mxu0 %v1506_v25 }
 0x248   : > { %1509 = vmatprep.subr.bf16.mxu0 %v1508_v34 }
 0x24b   : > { %1511 = vmatpush3.bf16.msra.mxu0 %v1510_v28 }
 0x24c   : > { %1513 = vmatprep.subr.bf16.mxu0 %v1512_v29  ;;  %v1037_v29 = vld [vmem:[%s2207_s6] sm:$0xff] }
 0x24f   : > { %1515 = vmatpush3.bf16.msra.mxu0 %v1514_v46 }
 0x250   : > { %1517 = vmatprep.subr.bf16.mxu0 %v1516_v32 }
 0x253   : > { %1519 = vmatpush3.bf16.msra.mxu0 %v1518_v38 }
 0x30b   : > { %v745_v10 = vpop.f32.mrb[2].mxu1 }
 0x30c   : > { %v2048_v11 = vadd.f32 %v745_v10, %v675_v6  ;;  %v747_v44 = vpop.f32.mrb[3].mxu1 }
 0x30d   : > { %v2050_v47 = vadd.f32 %v747_v44, %v675_v6 }
 0x30e   : > { %v750_v21 = vmax.f32 %v2048_v11, 0.0  ;;  %v1672_v11 = vmov 0.0|0.0  }
 0x30f   : > { %v751_v54 = vmax.f32 %v2050_v47, 0.0  ;;  %1520 = vmatprep.subr.bf16.mxu1 %v1672_v11  ;;  %1544 = vmatprep.subr.bf16.mxu0 %v1672_v11 }
 0x311   : > { %v1608_v60 = vpack.i.bf16 %v751_v54, %v750_v21 }
 0x313   : > { %1609 = vrot.lane.b32.xlu1 %v1608_v60, %s1666_s16  ;;  %v1296_v60 = vld [vmem:[%s2208_s7 + $0x2] ss:$0 sm:$0xff] }
 0x385   : > { %v1610_v39 = vpop.permute.xlu1 %1609 }
 0x386   : > { %v1612_v40 = vunpack.i.h.bf16 %v1610_v39  ;;  %v1611_v41 = vunpack.i.l.bf16 %v1610_v39 }
 0x388   : > { %v756_v42 = vsel %vm441_vm4, %v1611_v41, %v1612_v40  ;;  %v757_v43 = vsel %vm441_vm4, %v1612_v40, %v1611_v41 }
 0x389   : > { %v758_v5 = vmax.f32 %v750_v21, %v756_v42  ;;  %v759_v6 = vmax.f32 %v751_v54, %v757_v43  ;;  %v1295_v54 = vld [vmem:[%s2208_s7 + $0x1] ss:$0 sm:$0xff] }
 0x38b   : > { %v1613_v10 = vpack.i.bf16 %v759_v6, %v758_v5 }
 0x38d   : > { %1614 = vrot.lane.b32.xlu0 %v1613_v10, %s1670_s18  ;;  %s1675_s18 = smov 7  }
 0x3ff   : > { %v1615_v44 = vpop.permute.xlu0 %1614 }
 0x400   : > { %v1617_v48 = vunpack.i.h.bf16 %v1615_v44  ;;  %v1616_v49 = vunpack.i.l.bf16 %v1615_v44 }
 0x402   : > { %v765_v50 = vsel %vm485_vm6, %v1617_v48, %v1616_v49  ;;  %v764_v51 = vsel %vm485_vm6, %v1616_v49, %v1617_v48 }
 0x403   : > { %v767_v52 = vmax.f32 %v759_v6, %v765_v50  ;;  %v766_v53 = vmax.f32 %v758_v5, %v764_v51  ;;  %v1122_v50 = vld [vmem:[%s2209_s8] sm:$0xff]  ;;  %v1123_v51 = vld [vmem:[%s2209_s8 + $0x8] sm:$0xff] }
 0x405   : > { %864 = vmatprep.mubr.f32.mxu0 %v767_v52  ;;  %v1124_v52 = vld [vmem:[%s2209_s8 + $0x10] sm:$0xff] }
 0x406   : > { %865 = vmatmul.mubr.f32.vlgmr.msra.gmra.mrb[0].mxu0 %v766_v53  ;;  %v1545_v53 = vpack.c.bf16 %v1123_v51, %v1122_v50 }
 0x407   : > { %1453 = vmatprep.mubr.msk.f32.mxu0 %vm1676_vm9, %v1668_v2 }
 0x408   : > { %1546 = vmatpush3.bf16.msra.mxu0 %v1545_v53 }
 0x409   : > { %1547 = vmatprep.subr.bf16.mxu0 %v1672_v11 }
 0x4d9   : > { %v1339_v47 = vpop.f32.mrb[0].mxu0 }
 0x4da   : > { %v1340_v21 = vpop.f32.mrb[1].mxu0 }
 0x4db   : > { %v1341_v26 = vadd.f32 %v1340_v21, %v1339_v47  ;;  %v1126_v21 = vld [vmem:[%s2209_s8 + $0x20] sm:$0xff] }
 0x4dd   : > { %878 = vrot.lane.b32.xlu0 %v1341_v26, %s1673_s14  ;;  %870 = vrot.lane.b32.xlu1 %v1341_v26, %s1674_s17 }
 0x4e1   : > { %894 = vrot.lane.b32.xlu0 %v1341_v26, %s1665_s15  ;;  %886 = vrot.lane.b32.xlu1 %v1341_v26, %s1675_s18 }
 0x4e5   : > { %910 = vrot.lane.b32.xlu0 %v1341_v26, %s1677_s19  ;;  %902 = vrot.lane.b32.xlu1 %v1341_v26, %s1666_s16 }
 0x4e9   : > { %926 = vrot.lane.b32.xlu0 %v1341_v26, %s1678_s27  ;;  %918 = vrot.lane.b32.xlu1 %v1341_v26, %s1679_s28 }
 0x4ed   : > { %937 = vperm.xlu1 %1618, %v934_v7  }
 0x54f   : > { %v879_v4 = vpop.permute.xlu0 %878  ;;  %v871_v56 = vpop.permute.xlu1 %870 }
 0x550   : > { %v885_v57 = vmul.f32 %v1295_v54, %v879_v4  ;;  %v877_v58 = vmul.f32 %v1294_v55, %v871_v56 }
 0x552   : > { %v1521_v61 = vpack.c.bf16 %v885_v57, %v877_v58  ;;  %v1128_v57 = vld [vmem:[%s2209_s8 + $0x30] sm:$0xff]  ;;  %v1129_v58 = vld [vmem:[%s2209_s8 + $0x38] sm:$0xff] }
 0x553   : > { %v895_v62 = vpop.permute.xlu0 %894  ;;  %v887_v63 = vpop.permute.xlu1 %886 }
 0x554   : > { %v901_v3 = vmul.f32 %v1297_v59, %v895_v62  ;;  %v893_v1 = vmul.f32 %v1296_v60, %v887_v63  ;;  %1522 = vmatpush3.bf16.msra.mxu1 %v1521_v61  ;;  %v1130_v61 = vld [vmem:[%s2209_s8 + $0x40] sm:$0xff]  ;;  %v1131_v62 = vld [vmem:[%s2209_s8 + $0x48] sm:$0xff] }
 0x555   : > { %1523 = vmatprep.subr.bf16.mxu1 %v1672_v11  ;;  %v1557_v63 = vpack.c.bf16 %v1131_v62, %v1130_v61 }
 0x556   : > { %v1524_v15 = vpack.c.bf16 %v901_v3, %v893_v1  ;;  %v1132_v3 = vld [vmem:[%s2209_s8 + $0x50] sm:$0xff]  ;;  %v1133_v1 = vld [vmem:[%s2209_s8 + $0x58] sm:$0xff] }
 0x557   : > { %v903_v14 = vpop.permute.xlu1 %902  ;;  %v911_v12 = vpop.permute.xlu0 %910 }
 0x558   : > { %v909_v16 = vmul.f32 %v1298_v0, %v903_v14  ;;  %1525 = vmatpush3.bf16.msra.mxu1 %v1524_v15  ;;  %v917_v20 = vmul.f32 %v1299_v17, %v911_v12  ;;  %v1134_v15 = vld [vmem:[%s2209_s8 + $0x60] sm:$0xff]  ;;  %v1135_v14 = vld [vmem:[%s2209_s8 + $0x68] sm:$0xff]  ;;  %v1137_v12 = vld [vmem:[%s2209_s8 + $0x78] sm:$0xff] }
 0x559   : > { %1526 = vmatprep.subr.bf16.mxu1 %v1672_v11 }
 0x55a   : > { %v1527_v18 = vpack.c.bf16 %v909_v16, %v1341_v26  ;;  %v1127_v26 = vld [vmem:[%s2209_s8 + $0x28] sm:$0xff]  ;;  %v1563_v16 = vpack.c.bf16 %v1135_v14, %v1134_v15 }
 0x55b   : > { %v919_v19 = vpop.permute.xlu1 %918  ;;  %v927_v25 = vpop.permute.xlu0 %926  ;;  %v1551_v56 = vpack.c.bf16 %v1127_v26, %v1126_v21 }
 0x55c   : > { %v925_v22 = vmul.f32 %v1300_v13, %v919_v19  ;;  %1528 = vmatpush3.bf16.msra.mxu1 %v1527_v18  ;;  %v933_v34 = vmul.f32 %v1301_v24, %v927_v25 }
 0x55d   : > { %1529 = vmatprep.subr.bf16.mxu1 %v1672_v11 }
 0x55e   : > { %v1530_v23 = vpack.c.bf16 %v925_v22, %v917_v20 }
 0x560   : > { %1531 = vmatpush3.bf16.msra.mxu1 %v1530_v23 }
 0x561   : > { %1395 = vmatprep.subr.mxu1 %v1668_v2 }
 0x564   : > { %1396 = vmatpush3.msra.mxu1 %v933_v34 }
 0x565   : > { %1398 = vmatmul.mubr.msk.f32.vlgmr.msra.gmra.mrb[4].mxu1 %vm531_vm8, %v934_v7  ;;  %1532 = vmatprep.subr.bf16.mxu1 %v1672_v11 }
 0x566   : > { %1418 = vmatprep.mubr.msk.f32.mxu1 %vm1676_vm9, %v1668_v2 }
 0x56c   : > { %v938_v35 = vpop.permute.xlu1 %937 }
 0x638   : > { %v1008_v36 = vpop.f32.mrb[4].mxu1 }
 0x639   : > { %v1009_v37 = vadd.f32 %v1008_v36, %v938_v35  ;;  %v1399_v27 = vpop.f32.mrb[5].mxu1 }
 0x63b   : > { %v1012_v28 = vmax.f32 %v1009_v37, 0.0 }
 0x63d   : > { %1016 = vrot.lane.b32.xlu1 %v1012_v28, %s1673_s14  ;;  %1013 = vrot.lane.b32.xlu0 %v1012_v28, %s1674_s17 }
 0x641   : > { %1022 = vrot.lane.b32.xlu1 %v1012_v28, %s1665_s15  ;;  %1019 = vrot.lane.b32.xlu0 %v1012_v28, %s1675_s18  ;;  %s345_s15 = scalar_lea.vmem %s2210_s9, %s1284_s24 }
 0x645   : > { %1028 = vrot.lane.b32.xlu1 %v1012_v28, %s1677_s19  ;;  %1025 = vrot.lane.b32.xlu0 %v1012_v28, %s1666_s16 }
 0x649   : > { %1034 = vrot.lane.b32.xlu1 %v1012_v28, %s1678_s27  ;;  %1031 = vrot.lane.b32.xlu0 %v1012_v28, %s1679_s28 }
 0x64d   : > { %1040 = vperm.xlu0 %1607, %v1037_v29  }
 0x6af   : > { %v1017_v30 = vpop.permute.xlu1 %1016  ;;  %v1014_v45 = vpop.permute.xlu0 %1013 }
 0x6b0   : > { %v1018_v46 = vmul.f32 %v1295_v54, %v1017_v30  ;;  %v1015_v31 = vmul.f32 %v1294_v55, %v1014_v45 }
 0x6b2   : > { %v1533_v9 = vpack.c.bf16 %v1018_v46, %v1015_v31 }
 0x6b3   : > { %v1023_v32 = vpop.permute.xlu1 %1022  ;;  %v1020_v33 = vpop.permute.xlu0 %1019 }
 0x6b4   : > { %v1024_v8 = vmul.f32 %v1297_v59, %v1023_v32  ;;  %v1021_v38 = vmul.f32 %v1296_v60, %v1020_v33  ;;  %1534 = vmatpush3.bf16.msra.mxu1 %v1533_v9  ;;  %v1554_v60 = vpack.c.bf16 %v1129_v58, %v1128_v57 }
 0x6b5   : > { %1535 = vmatprep.subr.bf16.mxu1 %v1672_v11 }
 0x6b6   : > { %v1536_v39 = vpack.c.bf16 %v1024_v8, %v1021_v38 }
 0x6b7   : > { %v1026_v40 = vpop.permute.xlu0 %1025  ;;  %v1029_v42 = vpop.permute.xlu1 %1028 }
 0x6b8   : > { %v1027_v41 = vmul.f32 %v1298_v0, %v1026_v40  ;;  %1537 = vmatpush3.bf16.msra.mxu1 %v1536_v39  ;;  %v1030_v6 = vmul.f32 %v1299_v17, %v1029_v42  ;;  %v1560_v0 = vpack.c.bf16 %v1133_v1, %v1132_v3  ;;  %v1136_v17 = vld [vmem:[%s2209_s8 + $0x70] sm:$0xff] }
 0x6b9   : > { %1538 = vmatprep.subr.bf16.mxu1 %v1672_v11 }
 0x6ba   : > { %v1539_v43 = vpack.c.bf16 %v1027_v41, %v1012_v28 }
 0x6bb   : > { %v1032_v5 = vpop.permute.xlu0 %1031  ;;  %v1035_v48 = vpop.permute.xlu1 %1034 }
 0x6bc   : > { %v1033_v10 = vmul.f32 %v1300_v13, %v1032_v5  ;;  %1540 = vmatpush3.bf16.msra.mxu1 %v1539_v43  ;;  %v1036_v49 = vmul.f32 %v1301_v24, %v1035_v48  ;;  %v1566_v13 = vpack.c.bf16 %v1137_v12, %v1136_v17 }
 0x6bd   : > { %1541 = vmatprep.subr.bf16.mxu1 %v1672_v11 }
 0x6be   : > { %v1542_v44 = vpack.c.bf16 %v1033_v10, %v1030_v6 }
 0x6c0   : > { %1543 = vmatpush3.bf16.msra.mxu1 %v1542_v44 }
 0x6c1   : > { %1416 = vmatprep.subr.mxu1 %v1668_v2  ;;  %v1125_v2 = vld [vmem:[%s2209_s8 + $0x18] sm:$0xff] }
 0x6c2   : > { %v1548_v47 = vpack.c.bf16 %v1125_v2, %v1124_v52 }
 0x6c4   : > { %1417 = vmatpush3.msra.mxu1 %v1036_v49  ;;  %1549 = vmatpush3.bf16.msra.mxu0 %v1548_v47 }
 0x6c5   : > { %1419 = vmatmul.mubr.msk.f32.vlgmr.msra.gmra.mrb[6].mxu1 %vm531_vm8, %v1037_v29  ;;  %1550 = vmatprep.subr.bf16.mxu0 %v1672_v11 }
 0x6c8   : > { %1552 = vmatpush3.bf16.msra.mxu0 %v1551_v56 }
 0x6c9   : > { %1553 = vmatprep.subr.bf16.mxu0 %v1672_v11 }
 0x6cc   : > { %v1041_v7 = vpop.permute.xlu0 %1040  ;;  %1555 = vmatpush3.bf16.msra.mxu0 %v1554_v60 }
 0x6cd   : > { %1556 = vmatprep.subr.bf16.mxu0 %v1672_v11 }
 0x6d0   : > { %1558 = vmatpush3.bf16.msra.mxu0 %v1557_v63 }
 0x6d1   : > { %1559 = vmatprep.subr.bf16.mxu0 %v1672_v11 }
 0x6d4   : > { %1561 = vmatpush3.bf16.msra.mxu0 %v1560_v0 }
 0x6d5   : > { %1562 = vmatprep.subr.bf16.mxu0 %v1672_v11 }
 0x6d8   : > { %1564 = vmatpush3.bf16.msra.mxu0 %v1563_v16 }
 0x6d9   : > { %1565 = vmatprep.subr.bf16.mxu0 %v1672_v11 }
 0x6dc   : > { %1567 = vmatpush3.bf16.msra.mxu0 %v1566_v13 }
 0x798   : > { %v1111_v54 = vpop.f32.mrb[6].mxu1 }
 0x799   : > { %v1112_v55 = vadd.f32 %v1111_v54, %v1041_v7  ;;  %v1420_v4 = vpop.f32.mrb[7].mxu1 }
 0x79b   : > { %v1115_v59 = vmax.f32 %v1112_v55, 0.0 }
 0x79d   : > { %1116 = vrot.lane.b32.xlu1 %v1115_v59, %s1666_s16 }
 0x80f   : > { %v1117_v18 = vpop.permute.xlu1 %1116 }
 0x810   : > { %v1118_v19 = vmax.f32 %v1115_v59, %v1117_v18 }
 0x812   : > { %1119 = vrot.lane.b32.xlu0 %v1118_v19, %s1679_s28 }
 0x884   : > { %v1120_v20 = vpop.permute.xlu0 %1119 }
 0x885   : > { %v1121_v22 = vmax.f32 %v1118_v19, %v1120_v20 }
 0x887   : > { %1454 = vmatmul.mubr.f32.vlgmr.msra.gmra.mrb[2].mxu0 %v1121_v22 }
 0x95a   : > { %v1204_v23 = vpop.f32.mrb[2].mxu0 }
 0x95b   : > { %1209 = vst.msk [vmem:[%s345_s15] sm:$0xff] %vm1208_vm10, %v1204_v23  ;;  %v1455_v24 = vpop.f32.mrb[3].mxu0 }
 0x95c PF: > { %s20_s30 = sadd.s32 1, %s1657_s30  }
 0x95d   : > { %p17_p3 = scmp.ge.s32.totalorder %s20_s30, 4  }
 0x95f   :  { %19 = sbr.rel (!%p17_p3) target bundleno = 1 (0x1), region = 98 }
 0x966   :  { %1229 = vsyncpa [#allocation3], 1 }
 0x967   :  { %1231 = vsyncpa [#allocation3 + $0x1], 1 }

</bundles_post_ra>
